<compile_context>
chip_gen: v7x
topology: tpu7x:2x2x1
jax: 0.10.0
libtpu: 0.0.40
codegen_flags: <defaults>
</compile_context>

<pallas_src>
import jax
import jax.numpy as jnp
from jax.experimental import pallas as pl
from jax.experimental.pallas import tpu as pltpu

LANE = 128
NEG_PAD = -1e9  # finite "never wins the max" fill for padded action lanes


def _round_up(x, m):
    return ((x + m - 1) // m) * m


def _pad_to(x, shape):
    return jnp.pad(x, [(0, t - s) for s, t in zip(x.shape, shape)])


def _choose_tile(batch, tile_b):
    """Balanced batch tiles: >=2 grid steps when batch allows (v7x megacore),
    <= tile_b rows per tile, and only a few rows of padding."""
    if batch < 16:
        tb = _round_up(max(batch, 1), 8)
        return tb, tb
    n_tiles = max(2, pl.cdiv(batch, tile_b))
    tb = min(tile_b, _round_up(pl.cdiv(batch, n_tiles), 8))
    bp = _round_up(batch, tb)
    return tb, bp


# ----------------------------------------------------------------------------
# Shared in-kernel MLP: bf16 MXU inputs, f32 accumulation, f32 bias/ReLU.
# (Keeping bias/ReLU in f32 is required on v5e and is the safer precision choice.)
# ----------------------------------------------------------------------------
def _mlp_bf16(x_bf16, w1, b1, w2, b2, w3, b3):
    h1 = jnp.dot(x_bf16, w1, preferred_element_type=jnp.float32) + b1
    h1 = jnp.maximum(h1, 0.0)
    h2 = jnp.dot(h1.astype(jnp.bfloat16), w2, preferred_element_type=jnp.float32) + b2
    h2 = jnp.maximum(h2, 0.0)
    return jnp.dot(h2.astype(jnp.bfloat16), w3, preferred_element_type=jnp.float32) + b3


# ----------------------------------------------------------------------------
# Parameter prep: 128-lane padded, weights bf16, biases f32; last bias padded
# with a large negative so padded action lanes never win max/argmax.
# ----------------------------------------------------------------------------
def prepare_params(params):
    w1, b1, w2, b2, w3, b3 = params
    s, h1 = w1.shape
    h2 = w2.shape[1]
    a = w3.shape[1]
    h1p, h2p, ap = _round_up(h1, LANE), _round_up(h2, LANE), _round_up(a, LANE)
    b3p = jnp.pad(b3, ((0, 0), (0, ap - a)), constant_values=NEG_PAD)
    return (
        _pad_to(w1, (s, h1p)).astype(jnp.bfloat16),
        _pad_to(b1, (1, h1p)).astype(jnp.float32),
        _pad_to(w2, (h1p, h2p)).astype(jnp.bfloat16),
        _pad_to(b2, (1, h2p)).astype(jnp.float32),
        _pad_to(w3, (h2p, ap)).astype(jnp.bfloat16),
        b3p.astype(jnp.float32),
    )


# ----------------------------------------------------------------------------
# Forward kernel (Q(s) for one batch tile; weights VMEM-resident across the grid).
# ----------------------------------------------------------------------------
def dqn_forward_kernel(x_ref, w1_ref, b1_ref, w2_ref, b2_ref, w3_ref, b3_ref, o_ref):
    x = x_ref[...].astype(jnp.bfloat16)
    o_ref[...] = _mlp_bf16(x, w1_ref[...], b1_ref[...], w2_ref[...], b2_ref[...],
                           w3_ref[...], b3_ref[...])


def _fwd_specs(state, tb, padded_params):
    const = lambda i: (0, 0)
    return ([pl.BlockSpec((tb, state), lambda i: (i, 0))]
            + [pl.BlockSpec(p.shape, const) for p in padded_params])


def dqn_forward(x, padded_params, action_size, tile_b=512):
    ap = padded_params[4].shape[1]
    batch, state = x.shape
    tb, bp = _choose_tile(batch, tile_b)
    if bp != batch:
        x = jnp.pad(x, ((0, bp - batch), (0, 0)))
    out = pl.pallas_call(
        dqn_forward_kernel,
        out_shape=jax.ShapeDtypeStruct((bp, ap), jnp.float32),
        grid=(bp // tb,),
        in_specs=_fwd_specs(state, tb, padded_params),
        out_specs=pl.BlockSpec((tb, ap), lambda i: (i, 0)),
        compiler_params=pltpu.CompilerParams(dimension_semantics=("parallel",)),
    )(x, *padded_params)
    return out[:batch, :action_size]


# ----------------------------------------------------------------------------
# act() path: forward + greedy argmax fused, (tb,1) int32 output (no padded f32 slab).
# ----------------------------------------------------------------------------
def dqn_act_kernel(x_ref, w1_ref, b1_ref, w2_ref, b2_ref, w3_ref, b3_ref, a_ref):
    q = _mlp_bf16(x_ref[...].astype(jnp.bfloat16),
                  w1_ref[...], b1_ref[...], w2_ref[...], b2_ref[...],
                  w3_ref[...], b3_ref[...])
    m = jnp.max(q, axis=-1, keepdims=True)          # padded lanes are -1e9: never win
    lane = jax.lax.broadcasted_iota(jnp.int32, q.shape, 1).astype(jnp.float32)
    idx = jnp.min(jnp.where(q >= m, lane, jnp.float32(q.shape[-1])),
                  axis=-1, keepdims=True)           # first occurrence, like torch.argmax
    a_ref[...] = idx.astype(jnp.int32)


def dqn_act(x, padded_params, tile_b=512):
    batch, state = x.shape
    tb, bp = _choose_tile(batch, tile_b)
    if bp != batch:
        x = jnp.pad(x, ((0, bp - batch), (0, 0)))
    out = pl.pallas_call(
        dqn_act_kernel,
        out_shape=jax.ShapeDtypeStruct((bp, 1), jnp.int32),
        grid=(bp // tb,),
        in_specs=_fwd_specs(state, tb, padded_params),
        out_specs=pl.BlockSpec((tb, 1), lambda i: (i, 0)),
        compiler_params=pltpu.CompilerParams(dimension_semantics=("parallel",)),
    )(x, *padded_params)
    return out[:batch, 0]


# ----------------------------------------------------------------------------
# Fused replay-step kernel: online fwd + target fwd + in-kernel gather + TD target
# + per-tile sum-of-squares. Grid is fully parallel (per-tile partial output).
# ----------------------------------------------------------------------------
def dqn_replay_kernel(s_ref, ns_ref, act_ref, rd_ref,
                      w1_ref, b1_ref, w2_ref, b2_ref, w3_ref, b3_ref,
                      tw1_ref, tb1_ref, tw2_ref, tb2_ref, tw3_ref, tb3_ref,
                      partial_ref):
    q_s = _mlp_bf16(s_ref[...].astype(jnp.bfloat16),
                    w1_ref[...], b1_ref[...], w2_ref[...], b2_ref[...],
                    w3_ref[...], b3_ref[...])
    q_ns = _mlp_bf16(ns_ref[...].astype(jnp.bfloat16),
                     tw1_ref[...], tb1_ref[...], tw2_ref[...], tb2_ref[...],
                     tw3_ref[...], tb3_ref[...])

    # Q(s, a): lane mask from the int32 action column (padded rows use action=-1 -> 0).
    lane = jax.lax.broadcasted_iota(jnp.int32, q_s.shape, 1)
    current_q = jnp.sum(jnp.where(lane == act_ref[...], q_s, 0.0),
                        axis=-1, keepdims=True)

    # max_a' Q_target(s', a'): padded lanes carry bias -1e9, no mask needed.
    next_q = jnp.max(q_ns, axis=-1, keepdims=True)

    # rd = [reward, (1-done)*gamma]; padded rows are [0, 0] -> target 0, err 0.
    target_q = rd_ref[:, 0:1] + rd_ref[:, 1:2] * next_q
    err = current_q - target_q
    partial_ref[...] = jnp.sum(err * err, axis=0, keepdims=True)[None]


def dqn_replay_step(states, next_states, actions, rewards, dones,
                    online_padded, target_padded, gamma=0.95, tile_b=512):
    batch, state = states.shape
    tb, bp = _choose_tile(batch, tile_b)
    n_tiles = bp // tb

    act = actions.reshape(batch, 1).astype(jnp.int32)
    rd = jnp.stack([rewards.astype(jnp.float32),
                    (1.0 - dones.astype(jnp.float32)) * gamma], axis=1)

    if bp != batch:
        pad = bp - batch
        states = jnp.pad(states, ((0, pad), (0, 0)))
        next_states = jnp.pad(next_states, ((0, pad), (0, 0)))
        act = jnp.pad(act, ((0, pad), (0, 0)), constant_values=-1)  # selects no lane
        rd = jnp.pad(rd, ((0, pad), (0, 0)))                        # reward=0, (1-done)*g=0

    const = lambda i: (0, 0)
    batch_spec = lambda width: pl.BlockSpec((tb, width), lambda i: (i, 0))
    weight_specs = [pl.BlockSpec(p.shape, const)
                    for p in (*online_padded, *target_padded)]

    partial = pl.pallas_call(
        dqn_replay_kernel,
        out_shape=jax.ShapeDtypeStruct((n_tiles, 1, 1), jnp.float32),
        grid=(n_tiles,),
        in_specs=[batch_spec(state), batch_spec(state), batch_spec(1), batch_spec(2)]
                 + weight_specs,
        out_specs=pl.BlockSpec((1, 1, 1), lambda i: (i, 0, 0)),
        compiler_params=pltpu.CompilerParams(dimension_semantics=("parallel",)),
    )(states, next_states, act, rd, *online_padded, *target_padded)
    return jnp.sum(partial) / batch


# ----------------------------------------------------------------------------
# Reference (pure JAX, f32) + init matching torch.nn.Linear defaults.
# ----------------------------------------------------------------------------
def init_linear(key, fan_in, fan_out):
    kw, kb = jax.random.split(key)
    bound = 1.0 / jnp.sqrt(jnp.float32(fan_in))
    w = jax.random.uniform(kw, (fan_in, fan_out), jnp.float32, -bound, bound)
    b = jax.random.uniform(kb, (1, fan_out), jnp.float32, -bound, bound)
    return w, b


def reference_forward(x, params):
    w1, b1, w2, b2, w3, b3 = params
    h1 = jnp.maximum(x @ w1 + b1, 0.0)
    h2 = jnp.maximum(h1 @ w2 + b2, 0.0)
    return h2 @ w3 + b3


def reference_replay(states, next_states, actions, rewards, dones,
                     online, target, gamma):
    q_s = reference_forward(states, online)
    q_ns = reference_forward(next_states, target)
    current_q = jnp.take_along_axis(q_s, actions[:, None], axis=1)[:, 0]
    next_q = jnp.max(q_ns, axis=1)
    target_q = rewards + (1.0 - dones) * gamma * next_q
    return jnp.mean((current_q - target_q) ** 2)


if __name__ == "__main__":
    state_size = 8
    action_size = 4
    batch = 32  # DQNAgent.batch_size
    gamma = 0.95

    key = jax.random.PRNGKey(0)
    (k_x, k_ns, k_a, k_r, k_d,
     k1, k2, k3, t1, t2, t3) = jax.random.split(key, 11)

    x = jax.random.normal(k_x, (batch, state_size), jnp.float32)
    next_states = jax.random.normal(k_ns, (batch, state_size), jnp.float32)
    actions = jax.random.randint(k_a, (batch,), 0, action_size)
    rewards = jax.random.normal(k_r, (batch,), jnp.float32)
    dones = jax.random.bernoulli(k_d, 0.1, (batch,)).astype(jnp.float32)

    online = (*init_linear(k1, state_size, 64), *init_linear(k2, 64, 32),
              *init_linear(k3, 32, action_size))
    target = (*init_linear(t1, state_size, 64), *init_linear(t2, 64, 32),
              *init_linear(t3, 32, action_size))

    online_padded = prepare_params(online)
    target_padded = prepare_params(target)

    # 1) Fused forward pass (the nn.Module forward).
    out = jax.block_until_ready(dqn_forward(x, online_padded, action_size))
    ref = reference_forward(x, online)
    assert out.shape == (batch, action_size)
    # bf16 MXU inputs -> loosened tolerance vs f32 reference.
    assert jnp.allclose(out, ref, atol=5e-2, rtol=5e-2)

    # 2) Fused greedy-action kernel (deterministic part of act()).
    acts = jax.block_until_ready(dqn_act(x, online_padded))
    assert acts.shape == (batch,)
    assert bool(jnp.all((acts >= 0) & (acts < action_size)))
    chosen_q = jnp.take_along_axis(ref, acts[:, None].astype(jnp.int32), axis=1)[:, 0]
    assert bool(jnp.all(chosen_q >= ref.max(axis=1) - 1e-1))

    # 3) Fused replay-step target/loss computation (forward-only; no backward/Adam).
    loss = jax.block_until_ready(
        dqn_replay_step(x, next_states, actions, rewards, dones,
                        online_padded, target_padded, gamma=gamma))
    ref_loss = reference_replay(x, next_states, actions, rewards, dones,
                                online, target, gamma)
    assert jnp.allclose(loss, ref_loss, atol=5e-2, rtol=5e-2)

    print("KERNEL_OK")
</pallas_src>

<mosaic_0001>
module attributes {stable_mosaic.version = 11 : i64} {
  func.func @dqn_forward_kernel(%arg0: i32, %arg1: memref<16x8xf32, #tpu.memory_space<vmem>>, %arg2: memref<8x128xbf16, #tpu.memory_space<vmem>>, %arg3: memref<1x128xf32, #tpu.memory_space<vmem>>, %arg4: memref<128x128xbf16, #tpu.memory_space<vmem>>, %arg5: memref<1x128xf32, #tpu.memory_space<vmem>>, %arg6: memref<128x128xbf16, #tpu.memory_space<vmem>>, %arg7: memref<1x128xf32, #tpu.memory_space<vmem>>, %arg8: memref<16x128xf32, #tpu.memory_space<vmem>>) attributes {dimension_semantics = [#tpu.dimension_semantics<parallel>], iteration_bounds = array<i64: 2>, scalar_prefetch = 0 : i64, scratch_operands = 0 : i64, tpu.core_type = #tpu.core_type<tc>, window_params = [{transform_indices = @transform_0, window_bounds = array<i64: 16, 8>}, {pipeline_mode = #tpu.pipeline_mode<synchronous>, transform_indices = @transform_1, window_bounds = array<i64: 8, 128>}, {pipeline_mode = #tpu.pipeline_mode<synchronous>, transform_indices = @transform_2, window_bounds = array<i64: 1, 128>}, {pipeline_mode = #tpu.pipeline_mode<synchronous>, transform_indices = @transform_3, window_bounds = array<i64: 128, 128>}, {pipeline_mode = #tpu.pipeline_mode<synchronous>, transform_indices = @transform_4, window_bounds = array<i64: 1, 128>}, {pipeline_mode = #tpu.pipeline_mode<synchronous>, transform_indices = @transform_5, window_bounds = array<i64: 128, 128>}, {pipeline_mode = #tpu.pipeline_mode<synchronous>, transform_indices = @transform_6, window_bounds = array<i64: 1, 128>}, {transform_indices = @transform_7, window_bounds = array<i64: 16, 128>}]} {
    %c0 = arith.constant 0 : index
    %c0_0 = arith.constant 0 : index
    %0 = vector.load %arg1[%c0, %c0_0] : memref<16x8xf32, #tpu.memory_space<vmem>>, vector<16x8xf32>
    %1 = arith.truncf %0 : vector<16x8xf32> to vector<16x8xbf16>
    %c0_1 = arith.constant 0 : index
    %c0_2 = arith.constant 0 : index
    %2 = vector.load %arg2[%c0_1, %c0_2] : memref<8x128xbf16, #tpu.memory_space<vmem>>, vector<8x128xbf16>
    %c0_3 = arith.constant 0 : index
    %c0_4 = arith.constant 0 : index
    %3 = vector.load %arg3[%c0_3, %c0_4] : memref<1x128xf32, #tpu.memory_space<vmem>>, vector<1x128xf32>
    %c0_5 = arith.constant 0 : index
    %c0_6 = arith.constant 0 : index
    %4 = vector.load %arg4[%c0_5, %c0_6] : memref<128x128xbf16, #tpu.memory_space<vmem>>, vector<128x128xbf16>
    %c0_7 = arith.constant 0 : index
    %c0_8 = arith.constant 0 : index
    %5 = vector.load %arg5[%c0_7, %c0_8] : memref<1x128xf32, #tpu.memory_space<vmem>>, vector<1x128xf32>
    %c0_9 = arith.constant 0 : index
    %c0_10 = arith.constant 0 : index
    %6 = vector.load %arg6[%c0_9, %c0_10] : memref<128x128xbf16, #tpu.memory_space<vmem>>, vector<128x128xbf16>
    %c0_11 = arith.constant 0 : index
    %c0_12 = arith.constant 0 : index
    %7 = vector.load %arg7[%c0_11, %c0_12] : memref<1x128xf32, #tpu.memory_space<vmem>>, vector<1x128xf32>
    %cst = arith.constant dense<0.000000e+00> : vector<16x128xf32>
    %8 = tpu.matmul %1, %2, %cst {dimension_numbers = #tpu.dot_dimension_numbers<[1], [0], [0], [1], [0, 0, 1, 1], [], []>} : vector<16x8xbf16>, vector<8x128xbf16>, vector<16x128xf32> -> vector<16x128xf32>
    %9 = vector.broadcast %3 : vector<1x128xf32> to vector<16x128xf32>
    %10 = arith.addf %8, %9 : vector<16x128xf32>
    %cst_13 = arith.constant 0.000000e+00 : f32
    %11 = vector.broadcast %cst_13 : f32 to vector<16x128xf32>
    %12 = arith.maximumf %10, %11 : vector<16x128xf32>
    %13 = arith.truncf %12 : vector<16x128xf32> to vector<16x128xbf16>
    %cst_14 = arith.constant dense<0.000000e+00> : vector<16x128xf32>
    %14 = tpu.matmul %13, %4, %cst_14 {dimension_numbers = #tpu.dot_dimension_numbers<[1], [0], [0], [1], [0, 0, 1, 1], [], []>} : vector<16x128xbf16>, vector<128x128xbf16>, vector<16x128xf32> -> vector<16x128xf32>
    %15 = vector.broadcast %5 : vector<1x128xf32> to vector<16x128xf32>
    %16 = arith.addf %14, %15 : vector<16x128xf32>
    %cst_15 = arith.constant 0.000000e+00 : f32
    %17 = vector.broadcast %cst_15 : f32 to vector<16x128xf32>
    %18 = arith.maximumf %16, %17 : vector<16x128xf32>
    %19 = arith.truncf %18 : vector<16x128xf32> to vector<16x128xbf16>
    %cst_16 = arith.constant dense<0.000000e+00> : vector<16x128xf32>
    %20 = tpu.matmul %19, %6, %cst_16 {dimension_numbers = #tpu.dot_dimension_numbers<[1], [0], [0], [1], [0, 0, 1, 1], [], []>} : vector<16x128xbf16>, vector<128x128xbf16>, vector<16x128xf32> -> vector<16x128xf32>
    %21 = vector.broadcast %7 : vector<1x128xf32> to vector<16x128xf32>
    %22 = arith.addf %20, %21 : vector<16x128xf32>
    %c0_17 = arith.constant 0 : index
    %c0_18 = arith.constant 0 : index
    %23 = vector.load %arg8[%c0_17, %c0_18] : memref<16x128xf32, #tpu.memory_space<vmem>>, vector<16x128xf32>
    tpu.vector_store %arg8[%c0_17, %c0_18], %22 {strides = array<i32>} : memref<16x128xf32, #tpu.memory_space<vmem>>, vector<16x128xf32>,
    return
  }
  func.func @transform_0(%arg0: i32) -> (i32, i32) {
    %c0_i32 = arith.constant 0 : i32
    %c0_i32_0 = arith.constant 0 : i32
    return %arg0, %c0_i32 : i32, i32
  }
  func.func @transform_1(%arg0: i32) -> (i32, i32) {
    %c0_i32 = arith.constant 0 : i32
    %c0_i32_0 = arith.constant 0 : i32
    %c0_i32_1 = arith.constant 0 : i32
    return %c0_i32, %c0_i32_0 : i32, i32
  }
  func.func @transform_2(%arg0: i32) -> (i32, i32) {
    %c0_i32 = arith.constant 0 : i32
    %c0_i32_0 = arith.constant 0 : i32
    %c0_i32_1 = arith.constant 0 : i32
    return %c0_i32, %c0_i32_0 : i32, i32
  }
  func.func @transform_3(%arg0: i32) -> (i32, i32) {
    %c0_i32 = arith.constant 0 : i32
    %c0_i32_0 = arith.constant 0 : i32
    %c0_i32_1 = arith.constant 0 : i32
    return %c0_i32, %c0_i32_0 : i32, i32
  }
  func.func @transform_4(%arg0: i32) -> (i32, i32) {
    %c0_i32 = arith.constant 0 : i32
    %c0_i32_0 = arith.constant 0 : i32
    %c0_i32_1 = arith.constant 0 : i32
    return %c0_i32, %c0_i32_0 : i32, i32
  }
  func.func @transform_5(%arg0: i32) -> (i32, i32) {
    %c0_i32 = arith.constant 0 : i32
    %c0_i32_0 = arith.constant 0 : i32
    %c0_i32_1 = arith.constant 0 : i32
    return %c0_i32, %c0_i32_0 : i32, i32
  }
  func.func @transform_6(%arg0: i32) -> (i32, i32) {
    %c0_i32 = arith.constant 0 : i32
    %c0_i32_0 = arith.constant 0 : i32
    %c0_i32_1 = arith.constant 0 : i32
    return %c0_i32, %c0_i32_0 : i32, i32
  }
  func.func @transform_7(%arg0: i32) -> (i32, i32) {
    %c0_i32 = arith.constant 0 : i32
    %c0_i32_0 = arith.constant 0 : i32
    return %arg0, %c0_i32 : i32, i32
  }
}

</mosaic_0001>

<bundles_post_ra>
// kernel: tpu_custom_call.1
= control target key start
LH: loop header
LB: loop body
LE: loop exit
PB: predicated region body
PF: predicated region fallthrough
CT: control target
= control target key end

     0   :  { %12 = vsyncpa [#allocation3], 0  ;;  %s1272_s0 = inlined_call_operand.vmem [shape: f32[32,8], index: 0, kind: input, shape index: {}]   ;;  %s1273_s1 = inlined_call_operand.vmem [shape: bf16[8,128], index: 1, kind: input, shape index: {}]   ;;  %s1274_s2 = inlined_call_operand.vmem [shape: f32[1,128], index: 2, kind: input, shape index: {}]   ;;  %s1275_s3 = inlined_call_operand.hbm [shape: bf16[128,128], index: 3, kind: input, shape index: {}]   ;;  %s1276_s4 = inlined_call_operand.vmem [shape: f32[1,128], index: 4, kind: input, shape index: {}]   ;;  %s1277_s5 = inlined_call_operand.hbm [shape: bf16[128,128], index: 5, kind: input, shape index: {}]   ;;  %s1278_s6 = inlined_call_operand.vmem [shape: f32[1,128], index: 6, kind: input, shape index: {}]   ;;  %s1279_s7 = inlined_call_operand.hbm [shape: f32[32,128], index: 7, kind: output, shape index: {}]  }
   0x1   :  { %13 = vsyncpa [#allocation6], 0 }
   0x2   :  { %14 = vsyncpa [#allocation4], 0 }
   0x3   :  { %16 = vsyncpa [#allocation4 + $0x1], 0  ;;  %s1063_s24 = smov 0   ;;  %s1065_s25 = smov 0  }
   0x4   :  { %s1067_s26 = smov 0   ;;  %s1069_s27 = smov 0  }
   0x5 LB: > { %s1084_s28 = sadd.s32 4294967295, %s1012_s27   ;;  %s701_s29 = sadd.s32 4294967294, %s1012_s27   ;;  %s1012_s27 = sphi %s1069_s27, %s1299_s27   ;;  %s1008_s26 = sphi %s1067_s26, %s1298_s26   ;;  %s1004_s25 = sphi %s1065_s25, %s1297_s25   ;;  %s1000_s24 = sphi %s1063_s24, %s1296_s24  }
   0x6   : > { %s1088_s30 = sadd.s32 1, %s1012_s27   ;;  %s181_s8 = sadd.s32 1, %s1008_s26 }
   0x7   : > { %s178_s9 = ssub.s32 %s1012_s27, %s1088_s30  ;;  %p191_p0 = scmp.ne.s32.totalorder %s1008_s26, %s1004_s25 }
   0x8   : > { %p179_p1 = scmp.eq.s32.totalorder %s178_s9, 0  ;;  %p192_p2 = scmp.eq.s32.totalorder %s1084_s28, 1 }
   0x9   : > { %p197_p3 = scmp.ne.s32.totalorder %s1004_s25, %s1000_s24  ;;  %p198_p4 = scmp.eq.s32.totalorder %s701_s29, 1 }
   0xa   : > { %s1099_s10 = scalar_select %p179_p1, %s1008_s26, %s181_s8  }
   0xb   : > { %p1101_p5 = por %p192_p2, %p191_p0  ;;  %p1105_p6 = por %p198_p4, %p197_p3 }
   0xc   : > { %1283 = sst [smem:[#allocation11_spill]] %s1099_s10  ;;  %p702_p7 = scmp.ge.s32.totalorder %s1012_s27, 1 }
   0xd   : > { %s1284_s11 = scalar_select %p1101_p5, 1, 0 }
   0xe   : > { %s1285_s12 = scalar_select %p1105_p6, 1, 0 }
   0xf   : > { %p205_p8 = scmp.lt.s32.totalorder %s1012_s27, 3  ;;  %p1280_p9 = scmp.eq.s32.totalorder %s1084_s28, 0 }
  0x10   : > { %s1014_s14 = smov [#allocation2]   ;;  %s1015_s17 = smov [#allocation5]  }
  0x11   : > { %p1112_p10 = pnand %p702_p7, %p205_p8  ;;  %s223_s15 = sshll.u32 %s1014_s14, 4  ;;  %s224_s15 = int_to_ptr.vmem [resolvable:$true] %s223_s15 }
  0x12   : > { %s239_s18 = sshll.u32 %s1015_s17, 4  ;;  %s886_s21 = scalar_lea.hbm %s1275_s3, 1024  ;;  %s1124_s18 = int_to_ptr.vmem [resolvable:$true] %s239_s18 }
  0x13   : > { %s1286_s13 = scalar_select %p1112_p10, 1, 0 }
  0x14   : > { %p814_p11 = pneg %p1112_p10  ;;  %p887_p13 = scmp.ne.s32.totalorder %s1275_s3, %s886_s21 }
  0x15   : > { %p893_p3 = scmp.lt.u32.totalorder %s886_s21, %s1275_s3 }
  0x16   : > { %p1120_p12 = pnand %p1280_p9, %p814_p11 }
  0x18   : > { %p888_p0 = pneg %p1120_p12 }
  0x1a   : > { %p889_p1 = pnand %p888_p0, %p887_p13 }
  0x1c   : > { %p890_p2 = pneg %p889_p1 }
  0x1e   : > { %p895_p4 = pnand %p893_p3, %p890_p2 }
  0x20   : > { %898 = shalt.err (!%p895_p4)
}
  0x21   : > { %s899_s9 = scalar_lea.vmem %s224_s15, 1024  ;;  %p907_p9 = scmp.lt.s32.totalorder %s224_s15, %s224_s15 }
  0x22   : > { %p900_p7 = scmp.ne.s32.totalorder %s224_s15, %s899_s9  ;;  %p908_p6 = scmp.lt.s32.totalorder %s899_s9, %s899_s9 }
  0x24   : > { %p902_p8 = pnand %p900_p7, %p888_p0  ;;  %p909_p5 = por %p908_p6, %p907_p9 }
  0x26   : > { %p903_p11 = pneg %p902_p8 }
  0x28   : > { %p910_p10 = pnand %p909_p5, %p903_p11 }
  0x2a   : > { %913 = shalt.err (!%p910_p10)
}
  0x2b   : > { %s1016_s14 = smov 64   ;;  %s1017_s17 = smov 4  }
  0x2c   : > { %817 = dma.hbm_to_vmem [thread:$0]  (!%p1120_p12), %s1275_s3, 1024, %s224_s15, [#allocation3], %s1016_s14, %s1016_s14, %s1017_s17  }
  0x2d   : > { %s914_s23 = scalar_lea.hbm %s1277_s5, 1024 }
  0x2e   : > { %p915_p13 = scmp.ne.s32.totalorder %s1277_s5, %s914_s23  ;;  %p921_p9 = scmp.lt.u32.totalorder %s914_s23, %s1277_s5 }
  0x30   : > { %p917_p5 = pnand %p915_p13, %p888_p0 }
  0x32   : > { %p918_p6 = pneg %p917_p5 }
  0x34   : > { %p923_p10 = pnand %p921_p9, %p918_p6 }
  0x36   : > { %926 = shalt.err (!%p923_p10)
}
  0x37   : > { %s927_s15 = scalar_lea.vmem %s1124_s18, 1024  ;;  %p935_p4 = scmp.lt.s32.totalorder %s1124_s18, %s1124_s18 }
  0x38   : > { %p928_p1 = scmp.ne.s32.totalorder %s1124_s18, %s927_s15  ;;  %p936_p7 = scmp.lt.s32.totalorder %s927_s15, %s927_s15 }
  0x3a   : > { %p930_p2 = pnand %p928_p1, %p888_p0  ;;  %p937_p8 = por %p936_p7, %p935_p4 }
  0x3c   : > { %p931_p3 = pneg %p930_p2 }
  0x3e   : > { %p938_p11 = pnand %p937_p8, %p931_p3 }
  0x40   : > { %941 = shalt.err (!%p938_p11)
}
  0x41   : > { %820 = dma.hbm_to_vmem [thread:$0]  (!%p1120_p12), %s1277_s5, 1024, %s1124_s18, [#allocation6], %s1016_s14, %s1016_s14, %s1017_s17  }
  0x42   : > { %p1288_p13 = scmp.ne.s32.totalorder %s1286_s13, 0 }
  0x43   : > { %p1289_p5 = scmp.eq.s32.totalorder (!%p1288_p13), %s1084_s28, 0 }
  0x44   : > { %267 = sbr.rel (%p1288_p13) target bundleno = 760 (0x2f8), region = 48 }
  0x4b   : > { %987 = dma.done.wait (%p1289_p5), [#allocation3], 1024   ;;  %p1290_p0 = pmov %p1289_p5 }
  0x4d   : > { %989 = vsyncadd (%p1290_p0), [#allocation3], 4294966272  ;;  %p1291_p6 = pmov %p1290_p0 }
  0x4e   : > { %p1292_p9 = pmov %p1290_p0 }
  0x4f   : > { %991 = dma.done.wait (%p1291_p6), [#allocation6], 1024  }
  0x50   : > { %993 = vsyncadd (%p1292_p9), [#allocation6], 4294966272  ;;  %s710_s16 = sshll.u32 %s1084_s28, 1  ;;  %v1018_v0 = vmov 0.0   ;;  %vm1019_vm0 = vmmov 0   ;;  %vm360_vm1 = vcmask 1043456  }
  0x51   : > { %758 = vmatprep.subr.bf16.mxu0 %v1018_v0  ;;  %760 = vmatprep.mubr.msk.bf16.mxu0 %vm1019_vm0, %v1018_v0  ;;  %p304_p12 = scmp.lt.s32.totalorder %s710_s16, 3  ;;  %v314_v1 = vld [vmem:[%s1273_s1] sm:$0xf]  ;;  %vm356_vm2 = vcmask 64512   ;;  %v871_v7 = vld [vmem:[#allocation2 + $0x8] sm:$0xff]   ;;  %v872_v8 = vld [vmem:[#allocation2 + $0x10] sm:$0xff]  }
  0x52   : > { %764 = vmatprep.subr.bf16.mxu1 %v1018_v0  ;;  %780 = vmatprep.mubr.msk.bf16.mxu1 %vm1019_vm0, %v1018_v0  ;;  %v362_v4 = vsel %vm360_vm1, %v314_v1, 0  ;;  %v870_v6 = vld [vmem:[#allocation2] sm:$0xff]   ;;  %v873_v9 = vld [vmem:[#allocation2 + $0x18] sm:$0xff]   ;;  %v875_v11 = vld [vmem:[#allocation2 + $0x28] sm:$0xff]   ;;  %s300_s9 = sand.u32 1, %s1004_s25   ;;  %s737_s18 = sshll.u32 %s1084_s28, 8 }
  0x53   : > { %s1301_s16 = smov (!%p304_p12, %s710_s16), 3  ;;  %759 = vmatpush3.bf16.msra.mxu0 %v362_v4  ;;  %765 = vmatpush3.bf16.msra.mxu1 %v870_v6  ;;  %v874_v10 = vld [vmem:[#allocation2 + $0x20] sm:$0xff]   ;;  %v876_v12 = vld [vmem:[#allocation2 + $0x30] sm:$0xff]   ;;  %v877_v13 = vld [vmem:[#allocation2 + $0x38] sm:$0xff]   ;;  %s709_s15 = sshll.u32 %s300_s9, 4 }
  0x54   : > { %s711_s13 = sshll.u32 %s1301_s16, 3  ;;  %784 = vmatprep.subr.bf16.mxu0 %v1018_v0  ;;  %766 = vmatprep.subr.bf16.mxu1 %v1018_v0  ;;  %v878_v14 = vld [vmem:[#allocation5] sm:$0xff]   ;;  %v879_v15 = vld [vmem:[#allocation5 + $0x8] sm:$0xff]   ;;  %v880_v16 = vld [vmem:[#allocation5 + $0x10] sm:$0xff]   ;;  %s302_s16 = scalar_lea.vmem [#allocation7], %s709_s15 }
  0x55   : > { %s307_s17 = scalar_lea.vmem %s1272_s0, %s711_s13  ;;  %v881_v17 = vld [vmem:[#allocation5 + $0x18] sm:$0xff]   ;;  %v882_v18 = vld [vmem:[#allocation5 + $0x20] sm:$0xff]   ;;  %v883_v19 = vld [vmem:[#allocation5 + $0x28] sm:$0xff]   ;;  %s617_s13 = sshll.u32 %s302_s16, 4  ;;  %s1224_s13 = int_to_ptr.vmem [resolvable:$true] %s617_s13 }
  0x56   : > { %v311_v2 = vld [vmem:[%s307_s17] sm:$0xff]  ;;  %v312_v3 = vld [vmem:[%s307_s17 + $0x8] sm:$0xff]  ;;  %v884_v30 = vld [vmem:[#allocation5 + $0x30] sm:$0xff]   ;;  %s1229_s20 = scalar_lea.hbm %s1279_s7, %s737_s18  ;;  %s1231_s21 = scalar_lea.sflag [#allocation4], %s300_s9 }
  0x57   : > { %v313_v5 = vpack.c.bf16 %v312_v3, %v311_v2  ;;  %767 = vmatpush3.bf16.msra.mxu1 %v871_v7  ;;  %v712_v20 = vld [vmem:[%s1274_s2] ss:$0 sm:$0xff]  ;;  %v885_v31 = vld [vmem:[#allocation5 + $0x38] sm:$0xff]   ;;  %s942_s28 = scalar_lea.vmem %s1224_s13, 256  ;;  %p1293_p1 = scmp.ne.s32.totalorder %s1284_s11, 0 }
  0x58   : > { %768 = vmatprep.subr.bf16.mxu1 %v1018_v0  ;;  %v714_v32 = vld [vmem:[%s1276_s4] ss:$0 sm:$0xff]  ;;  %p943_p10 = scmp.ne.s32.totalorder %s1224_s13, %s942_s28  ;;  %s1020_s22 = smov [#allocation7]  }
  0x59   : > { %761 = vmatmul.mubr.msk.bf16.vlgmr.msra.gmra.mrb[0].mxu0 %vm356_vm2, %v313_v5  ;;  %v723_v42 = vld [vmem:[%s1278_s6] ss:$0 sm:$0xff]  ;;  %s946_s23 = sshll.u32 %s1020_s22, 4  ;;  %s947_s23 = int_to_ptr.vmem [resolvable:$false] %s946_s23 }
  0x5a   : > { %800 = vmatprep.mubr.msk.bf16.mxu0 %vm1019_vm0, %v1018_v0  ;;  %785 = vmatpush3.bf16.msra.mxu0 %v878_v14  ;;  %p944_p2 = pnand %p943_p10, %p1293_p1  ;;  %s948_s29 = scalar_lea.vmem %s947_s23, 512 }
  0x5b   : > { %769 = vmatpush3.bf16.msra.mxu1 %v872_v8  ;;  %786 = vmatprep.subr.bf16.mxu0 %v1018_v0  ;;  %p949_p4 = scmp.lt.s32.totalorder %s1224_s13, %s947_s23  ;;  %p950_p7 = scmp.lt.s32.totalorder %s948_s29, %s942_s28 }
  0x5c   : > { %770 = vmatprep.subr.bf16.mxu1 %v1018_v0  ;;  %p945_p3 = pneg %p944_p2 }
  0x5d   : > { %p951_p8 = por %p950_p7, %p949_p4 }
  0x5e   : > { %787 = vmatpush3.bf16.msra.mxu0 %v879_v15 }
  0x5f   : > { %771 = vmatpush3.bf16.msra.mxu1 %v873_v9  ;;  %788 = vmatprep.subr.bf16.mxu0 %v1018_v0  ;;  %p952_p11 = pnand %p951_p8, %p945_p3 }
  0x60   : > { %772 = vmatprep.subr.bf16.mxu1 %v1018_v0 }
  0x62   : > { %789 = vmatpush3.bf16.msra.mxu0 %v880_v16 }
  0x63   : > { %773 = vmatpush3.bf16.msra.mxu1 %v874_v10  ;;  %790 = vmatprep.subr.bf16.mxu0 %v1018_v0 }
  0x64   : > { %774 = vmatprep.subr.bf16.mxu1 %v1018_v0 }
  0x66   : > { %791 = vmatpush3.bf16.msra.mxu0 %v881_v17 }
  0x67   : > { %775 = vmatpush3.bf16.msra.mxu1 %v875_v11  ;;  %792 = vmatprep.subr.bf16.mxu0 %v1018_v0 }
  0x68   : > { %776 = vmatprep.subr.bf16.mxu1 %v1018_v0 }
  0x6a   : > { %793 = vmatpush3.bf16.msra.mxu0 %v882_v18 }
  0x6b   : > { %777 = vmatpush3.bf16.msra.mxu1 %v876_v12  ;;  %794 = vmatprep.subr.bf16.mxu0 %v1018_v0 }
  0x6c   : > { %778 = vmatprep.subr.bf16.mxu1 %v1018_v0 }
  0x6e   : > { %795 = vmatpush3.bf16.msra.mxu0 %v883_v19 }
  0x6f   : > { %779 = vmatpush3.bf16.msra.mxu1 %v877_v13  ;;  %796 = vmatprep.subr.bf16.mxu0 %v1018_v0 }
  0x72   : > { %797 = vmatpush3.bf16.msra.mxu0 %v884_v30 }
  0x73   : > { %798 = vmatprep.subr.bf16.mxu0 %v1018_v0 }
  0x76   : > { %799 = vmatpush3.bf16.msra.mxu0 %v885_v31 }
 0x12c   : > { %v398_v21 = vpop.f32.mrb[0].mxu0 }
 0x12d   : > { %v399_v22 = vadd.f32 %v712_v20, %v398_v21  ;;  %v762_v23 = vpop.f32.mrb[1].mxu0 }
 0x12e   : > { %v401_v24 = vpop.f32.mrb[2].mxu0 }
 0x12f   : > { %v402_v25 = vadd.f32 %v712_v20, %v401_v24  ;;  %v763_v26 = vpop.f32.mrb[3].mxu0  ;;  %v405_v27 = vmax.f32 %v399_v22, 0.0 }
 0x131   : > { %v406_v28 = vmax.f32 %v402_v25, 0.0 }
 0x133   : > { %v407_v29 = vpack.c.bf16 %v406_v28, %v405_v27 }
 0x135   : > { %781 = vmatmul.mubr.bf16.vlgmr.msra.gmra.mrb[0].mxu1 %v407_v29 }
 0x208   : > { %v496_v33 = vpop.f32.mrb[0].mxu1 }
 0x209   : > { %v497_v34 = vadd.f32 %v714_v32, %v496_v33  ;;  %v782_v35 = vpop.f32.mrb[1].mxu1 }
 0x20a   : > { %v499_v36 = vpop.f32.mrb[2].mxu1 }
 0x20b   : > { %v500_v37 = vadd.f32 %v714_v32, %v499_v36  ;;  %v783_v38 = vpop.f32.mrb[3].mxu1  ;;  %v503_v39 = vmax.f32 %v497_v34, 0.0 }
 0x20d   : > { %v504_v40 = vmax.f32 %v500_v37, 0.0 }
 0x20f   : > { %v505_v41 = vpack.c.bf16 %v504_v40, %v503_v39 }
 0x211   : > { %801 = vmatmul.mubr.bf16.vlgmr.msra.gmra.mrb[4].mxu0 %v505_v41 }
 0x2e4   : > { %v594_v43 = vpop.f32.mrb[4].mxu0 }
 0x2e5   : > { %v595_v44 = vadd.f32 %v723_v42, %v594_v43  ;;  %v802_v45 = vpop.f32.mrb[5].mxu0 }
 0x2e6   : > { %v597_v46 = vpop.f32.mrb[6].mxu0 }
 0x2e7   : > { %601 = vst [vmem:[%s302_s16] sm:$0xff] %v595_v44  ;;  %v598_v47 = vadd.f32 %v723_v42, %v597_v46  ;;  %v803_v48 = vpop.f32.mrb[7].mxu0 }
 0x2e9   : > { %602 = vst [vmem:[%s302_s16 + $0x8] sm:$0xff] %v598_v47 }
 0x2ea   : > { %955 = shalt.err (!%p952_p11)
}
 0x2eb   : > { %s956_s8 = scalar_lea.hbm %s1229_s20, 256  ;;  %s960_s10 = scalar_lea.hbm %s1279_s7, 512 }
 0x2ec   : > { %p957_p13 = scmp.ne.s32.totalorder %s1229_s20, %s956_s8  ;;  %p961_p6 = scmp.lt.u32.totalorder %s1229_s20, %s1279_s7 }
 0x2ed   : > { %p962_p9 = scmp.lt.u32.totalorder %s960_s10, %s956_s8  ;;  %p964_p10 = scmp.lt.u32.totalorder %s956_s8, %s1229_s20 }
 0x2ee   : > { %p958_p5 = pnand %p957_p13, %p1293_p1 }
 0x2ef   : > { %p963_p12 = por %p962_p9, %p961_p6 }
 0x2f0   : > { %p959_p0 = pneg %p958_p5 }
 0x2f1   : > { %p965_p2 = por %p964_p10, %p963_p12 }
 0x2f3   : > { %p966_p3 = pnand %p965_p2, %p959_p0 }
 0x2f5   : > { %969 = shalt.err (!%p966_p3)
}
 0x2f6   : > { %s1021_s18 = smov 128   ;;  %s1022_s14 = smov 8  }
 0x2f7   : > { %812 = dma.vmem_to_hbm [thread:$0]  (%p1293_p1), %s1224_s13, 256, %s1229_s20, %s1231_s21, %s1021_s18, %s1021_s18, %s1022_s14  }
 0x2f8 PF: > { %p829_p4 = scmp.ge.s32.totalorder %s1012_s27, 2  ;;  %s632_s17 = sand.u32 1, %s1000_s24  }
 0x2f9   : > { %p1294_p7 = scmp.ne.s32.totalorder %s1285_s12, 0  ;;  %s633_s28 = scalar_lea.sflag [#allocation4], %s632_s17 }
 0x2fb   : > { %p822_p8 = pnand %p829_p4, %p1294_p7 }
 0x2fd   : > { %995 = dma.done.wait (!%p822_p8), %s633_s28, 256  }
 0x2fe   : > { %997 = vsyncadd (!%p822_p8), %s633_s28, 4294967040  ;;  %s1295_s22 = sld [smem:[#allocation11_spill]]  ;;  %p19_p11 = scmp.ge.s32.totalorder %s1088_s30, 4  }
 0x2ff   : > { %s1296_s24 = smov %s1004_s25  ;;  %s1297_s25 = smov %s1008_s26 }
 0x300   : > { %s1299_s27 = smov %s1088_s30  ;;  %21 = sbr.rel (!%p19_p11) target bundleno = 5 (0x5), region = 92 }
 0x304   : > { %s1298_s26 = smov %s1295_s22 }
 0x307   :  { %638 = vsyncpa [#allocation3], 1 }
 0x308   :  { %640 = vsyncpa [#allocation3 + $0x1], 1 }
 0x309   :  { %641 = vsyncpa [#allocation6], 1 }
 0x30a   :  { %642 = vsyncpa [#allocation4], 1 }
 0x30b   :  { %644 = vsyncpa [#allocation4 + $0x1], 1 }

</bundles_post_ra>
